<compile_context>
chip_gen: v6e
topology: v6e:2x2x1
jax: 0.10.0
libtpu: 0.0.40
codegen_flags: <defaults>
</compile_context>

<pallas_src>
import functools

import jax
import jax.numpy as jnp
from jax.experimental import pallas as pl
from jax.experimental.pallas import tpu as pltpu

LANE = 128
SUBLANE = 8


def _round_up(v, m):
    return (v + m - 1) // m * m


def _mlp_fused_kernel(x_ref, *refs, n_layers: int):
    """Fused MLP on one batch tile.

    refs = (w0, b0, w1, b1, ..., w_{L-1}, b_{L-1}, out_ref)
    Weights are bf16 (zero-padded), biases fp32 (zero-padded); intermediates stay in
    vregs across the Python-unrolled layers.  Accumulation is fp32.
    """
    out_ref = refs[-1]
    h = x_ref[...].astype(jnp.float32)
    for i in range(n_layers):
        w = refs[2 * i][...]          # bf16 (K_i, Np_i)
        b = refs[2 * i + 1][...]      # fp32 (1, Np_i), broadcasts over batch rows
        h = jnp.dot(h.astype(jnp.bfloat16), w,
                    preferred_element_type=jnp.float32) + b
        if i != n_layers - 1:
            h = jnp.maximum(h, 0.0)
            # TODO(synk): train-mode dropout would go here (eval mode => identity).
    out_ref[...] = h.astype(out_ref.dtype)


def prepare_params(params, *, wide_align=256):
    """Pad/cast the parameters ONCE (hoisted out of the per-call forward path).

    Layer 0 keeps its true K (x is never padded); layer i>0 pads K to the previous
    layer's padded N; every N is padded to a lane multiple (128, or 256 for wide layers
    so v6e/v7x can run full-width MXU passes).  Padding is mathematically inert:
    zero weight rows/cols + zero bias + ReLU(0)=0.  Weights are stored bf16 (MXU
    operands), biases fp32 (fp32 bias add / accumulation in the kernel).
    """
    padded = []
    prev_k = params[0][0].shape[0]           # layer-0 K stays unpadded
    for w_t, b in params:
        K, N = w_t.shape
        align = wide_align if N >= wide_align else LANE
        Np = _round_up(N, align)
        w_p = jnp.zeros((prev_k, Np), jnp.bfloat16).at[:K, :N].set(w_t.astype(jnp.bfloat16))
        b_p = jnp.zeros((1, Np), jnp.float32).at[0, :N].set(b.astype(jnp.float32))
        padded.append((w_p, b_p))
        prev_k = Np
    return padded


def _invariant_spec(shape):
    """Grid-invariant block (weights/biases): index_map never changes, so a single VMEM
    buffer suffices -> halves resident-weight footprint vs default double-buffering."""
    idx = lambda i: (0, 0)
    try:
        return pl.BlockSpec(shape, idx, pipeline_mode=pl.Buffered(1))
    except (TypeError, AttributeError):      # older Pallas without pipeline_mode/Buffered
        return pl.BlockSpec(shape, idx)


def nn_dynamical_forward(x, padded_params, n_out, *, block_m=256):
    """Replicates NN_dynamical.forward (eval mode) with one fused Pallas call.

    x: (M, dims[0]) float; padded_params: output of prepare_params (padded once at init);
    n_out: true output width (dims[-1]).
    """
    x = x.astype(jnp.float32)
    M, K0 = x.shape
    n_layers = len(padded_params)
    assert padded_params[0][0].shape[0] == K0, "layer-0 weight K must match x feature dim"
    Noutp = padded_params[-1][0].shape[1]

    # Batch (sublane) tile: multiple of 8 (or the full tiny batch).  For v7x, split into
    # >= 2 grid steps when the batch allows so the "parallel" axis feeds both TensorCores.
    tm = max(SUBLANE, min(block_m, _round_up(M, SUBLANE)))
    if M < SUBLANE:
        tm = M                                    # full-extent batch block (exact fit)
    elif M >= 2 * SUBLANE and pl.cdiv(M, tm) < 2:
        tm = _round_up(pl.cdiv(M, 2), SUBLANE)
    grid_m = pl.cdiv(M, tm)                       # partial last tile handled by Pallas;
                                                  # extra rows are discarded by the wrapper

    # x tile walks the batch grid; weights/biases are grid-invariant (VMEM-resident).
    in_specs = [pl.BlockSpec((tm, K0), lambda i: (i, 0))]
    flat_params = []
    for w_p, b_p in padded_params:
        in_specs.append(_invariant_spec(w_p.shape))
        in_specs.append(_invariant_spec(b_p.shape))
        flat_params.extend([w_p, b_p])

    # VMEM budget from the actual footprint: resident weights/biases + double-buffered
    # x/out tiles + fp32 intermediate headroom (floor 32 MiB, cap 64 MiB = v7x physical).
    w_bytes = sum(int(w.size) * w.dtype.itemsize + int(b.size) * b.dtype.itemsize
                  for w, b in padded_params)
    max_np = max(int(w.shape[1]) for w, _ in padded_params)
    io_bytes = 2 * tm * K0 * 4 + 2 * tm * Noutp * 4
    interm_bytes = 4 * tm * max_np * 4
    vmem_limit = int(min(max(2 * w_bytes + io_bytes + interm_bytes + (2 << 20), 32 << 20),
                         64 << 20))

    out_pad = pl.pallas_call(
        functools.partial(_mlp_fused_kernel, n_layers=n_layers),
        out_shape=jax.ShapeDtypeStruct((M, Noutp), jnp.float32),
        grid=(grid_m,),
        in_specs=in_specs,
        out_specs=pl.BlockSpec((tm, Noutp), lambda i: (i, 0)),
        compiler_params=pltpu.CompilerParams(
            dimension_semantics=("parallel",),    # v7x: shard batch tiles across 2 TCs
            vmem_limit_bytes=vmem_limit,
        ),
    )(x, *flat_params)

    return out_pad[:, :n_out]


def init_params(key, dims):
    """nn.Linear-style init; weights stored pre-transposed as (in, out) so y = x @ W_t + b."""
    params = []
    for i in range(len(dims) - 1):
        key, kw, kb = jax.random.split(key, 3)
        fan_in = dims[i]
        bound = 1.0 / jnp.sqrt(fan_in)
        w_t = jax.random.uniform(kw, (dims[i], dims[i + 1]),
                                 minval=-bound, maxval=bound, dtype=jnp.float32)
        b = jax.random.uniform(kb, (dims[i + 1],),
                               minval=-bound, maxval=bound, dtype=jnp.float32)
        params.append((w_t, b))
    return params


def reference_forward(x, params):
    x = x.astype(jnp.float32)
    n_layers = len(params)
    for i, (w_t, b) in enumerate(params):
        x = x @ w_t + b
        if i != n_layers - 1:
            x = jnp.maximum(x, 0.0)
    return x


if __name__ == "__main__":
    # MLP dims [16, 32, 32, 8]; dropouts are identity in eval mode.
    dims = [16, 32, 32, 8]
    dropouts = [True, False, True]

    key = jax.random.PRNGKey(0)
    key, kx = jax.random.split(key)
    params = init_params(key, dims)
    padded = prepare_params(params)            # hoisted: pad / bf16-cast once, not per call

    # Case 1: tiny batch (module-consistent toy shape), exact-fit single tile.
    x = jax.random.normal(kx, (4, dims[0]), dtype=jnp.float32)
    out = jax.block_until_ready(nn_dynamical_forward(x, padded, dims[-1]))
    ref = reference_forward(x, params)
    assert out.shape == (4, dims[-1])
    assert jnp.allclose(out, ref, atol=5e-2, rtol=5e-2), \
        "mismatch vs fp32 reference (bf16 MXU operands)"

    # Case 2: multi-tile batch exercising the cdiv grid + partial last tile (no padded x copy).
    key, kx2 = jax.random.split(key)
    x2 = jax.random.normal(kx2, (20, dims[0]), dtype=jnp.float32)
    out2 = jax.block_until_ready(nn_dynamical_forward(x2, padded, dims[-1], block_m=16))
    ref2 = reference_forward(x2, params)
    assert out2.shape == (20, dims[-1])
    assert jnp.allclose(out2, ref2, atol=5e-2, rtol=5e-2), "mismatch on partial-tile path"

    print("KERNEL_OK")
</pallas_src>

<mosaic_0001>
module attributes {stable_mosaic.version = 11 : i64} {
  func.func @_mlp_fused_kernel(%arg0: i32, %arg1: memref<4x16xf32, #tpu.memory_space<vmem>>, %arg2: memref<16x128xbf16, #tpu.memory_space<vmem>>, %arg3: memref<1x128xf32, #tpu.memory_space<vmem>>, %arg4: memref<128x128xbf16, #tpu.memory_space<vmem>>, %arg5: memref<1x128xf32, #tpu.memory_space<vmem>>, %arg6: memref<128x128xbf16, #tpu.memory_space<vmem>>, %arg7: memref<1x128xf32, #tpu.memory_space<vmem>>, %arg8: memref<4x128xf32, #tpu.memory_space<vmem>>) attributes {dimension_semantics = [#tpu.dimension_semantics<parallel>], iteration_bounds = array<i64: 1>, scalar_prefetch = 0 : i64, scratch_operands = 0 : i64, tpu.core_type = #tpu.core_type<tc>, window_params = [{transform_indices = @transform_0, window_bounds = array<i64: 4, 16>}, {pipeline_mode = #tpu.pipeline_mode<synchronous>, transform_indices = @transform_1, window_bounds = array<i64: 16, 128>}, {pipeline_mode = #tpu.pipeline_mode<synchronous>, transform_indices = @transform_2, window_bounds = array<i64: 1, 128>}, {pipeline_mode = #tpu.pipeline_mode<synchronous>, transform_indices = @transform_3, window_bounds = array<i64: 128, 128>}, {pipeline_mode = #tpu.pipeline_mode<synchronous>, transform_indices = @transform_4, window_bounds = array<i64: 1, 128>}, {pipeline_mode = #tpu.pipeline_mode<synchronous>, transform_indices = @transform_5, window_bounds = array<i64: 128, 128>}, {pipeline_mode = #tpu.pipeline_mode<synchronous>, transform_indices = @transform_6, window_bounds = array<i64: 1, 128>}, {transform_indices = @transform_7, window_bounds = array<i64: 4, 128>}]} {
    %c0 = arith.constant 0 : index
    %c0_0 = arith.constant 0 : index
    %0 = vector.load %arg1[%c0, %c0_0] : memref<4x16xf32, #tpu.memory_space<vmem>>, vector<4x16xf32>
    %c0_1 = arith.constant 0 : index
    %c0_2 = arith.constant 0 : index
    %1 = vector.load %arg2[%c0_1, %c0_2] : memref<16x128xbf16, #tpu.memory_space<vmem>>, vector<16x128xbf16>
    %c0_3 = arith.constant 0 : index
    %c0_4 = arith.constant 0 : index
    %2 = vector.load %arg3[%c0_3, %c0_4] : memref<1x128xf32, #tpu.memory_space<vmem>>, vector<1x128xf32>
    %3 = arith.truncf %0 : vector<4x16xf32> to vector<4x16xbf16>
    %cst = arith.constant dense<0.000000e+00> : vector<4x128xf32>
    %4 = tpu.matmul %3, %1, %cst {dimension_numbers = #tpu.dot_dimension_numbers<[1], [0], [0], [1], [0, 0, 1, 1], [], []>} : vector<4x16xbf16>, vector<16x128xbf16>, vector<4x128xf32> -> vector<4x128xf32>
    %5 = vector.broadcast %2 : vector<1x128xf32> to vector<4x128xf32>
    %6 = arith.addf %4, %5 : vector<4x128xf32>
    %cst_5 = arith.constant 0.000000e+00 : f32
    %7 = vector.broadcast %cst_5 : f32 to vector<4x128xf32>
    %8 = arith.maximumf %6, %7 : vector<4x128xf32>
    %c0_6 = arith.constant 0 : index
    %c0_7 = arith.constant 0 : index
    %9 = vector.load %arg4[%c0_6, %c0_7] : memref<128x128xbf16, #tpu.memory_space<vmem>>, vector<128x128xbf16>
    %c0_8 = arith.constant 0 : index
    %c0_9 = arith.constant 0 : index
    %10 = vector.load %arg5[%c0_8, %c0_9] : memref<1x128xf32, #tpu.memory_space<vmem>>, vector<1x128xf32>
    %11 = arith.truncf %8 : vector<4x128xf32> to vector<4x128xbf16>
    %cst_10 = arith.constant dense<0.000000e+00> : vector<4x128xf32>
    %12 = tpu.matmul %11, %9, %cst_10 {dimension_numbers = #tpu.dot_dimension_numbers<[1], [0], [0], [1], [0, 0, 1, 1], [], []>} : vector<4x128xbf16>, vector<128x128xbf16>, vector<4x128xf32> -> vector<4x128xf32>
    %13 = vector.broadcast %10 : vector<1x128xf32> to vector<4x128xf32>
    %14 = arith.addf %12, %13 : vector<4x128xf32>
    %cst_11 = arith.constant 0.000000e+00 : f32
    %15 = vector.broadcast %cst_11 : f32 to vector<4x128xf32>
    %16 = arith.maximumf %14, %15 : vector<4x128xf32>
    %c0_12 = arith.constant 0 : index
    %c0_13 = arith.constant 0 : index
    %17 = vector.load %arg6[%c0_12, %c0_13] : memref<128x128xbf16, #tpu.memory_space<vmem>>, vector<128x128xbf16>
    %c0_14 = arith.constant 0 : index
    %c0_15 = arith.constant 0 : index
    %18 = vector.load %arg7[%c0_14, %c0_15] : memref<1x128xf32, #tpu.memory_space<vmem>>, vector<1x128xf32>
    %19 = arith.truncf %16 : vector<4x128xf32> to vector<4x128xbf16>
    %cst_16 = arith.constant dense<0.000000e+00> : vector<4x128xf32>
    %20 = tpu.matmul %19, %17, %cst_16 {dimension_numbers = #tpu.dot_dimension_numbers<[1], [0], [0], [1], [0, 0, 1, 1], [], []>} : vector<4x128xbf16>, vector<128x128xbf16>, vector<4x128xf32> -> vector<4x128xf32>
    %21 = vector.broadcast %18 : vector<1x128xf32> to vector<4x128xf32>
    %22 = arith.addf %20, %21 : vector<4x128xf32>
    %c0_17 = arith.constant 0 : index
    %c0_18 = arith.constant 0 : index
    %23 = vector.load %arg8[%c0_17, %c0_18] : memref<4x128xf32, #tpu.memory_space<vmem>>, vector<4x128xf32>
    tpu.vector_store %arg8[%c0_17, %c0_18], %22 {strides = array<i32>} : memref<4x128xf32, #tpu.memory_space<vmem>>, vector<4x128xf32>,
    return
  }
  func.func @transform_0(%arg0: i32) -> (i32, i32) {
    %c0_i32 = arith.constant 0 : i32
    %c0_i32_0 = arith.constant 0 : i32
    return %arg0, %c0_i32 : i32, i32
  }
  func.func @transform_1(%arg0: i32) -> (i32, i32) {
    %c0_i32 = arith.constant 0 : i32
    %c0_i32_0 = arith.constant 0 : i32
    %c0_i32_1 = arith.constant 0 : i32
    return %c0_i32, %c0_i32_0 : i32, i32
  }
  func.func @transform_2(%arg0: i32) -> (i32, i32) {
    %c0_i32 = arith.constant 0 : i32
    %c0_i32_0 = arith.constant 0 : i32
    %c0_i32_1 = arith.constant 0 : i32
    return %c0_i32, %c0_i32_0 : i32, i32
  }
  func.func @transform_3(%arg0: i32) -> (i32, i32) {
    %c0_i32 = arith.constant 0 : i32
    %c0_i32_0 = arith.constant 0 : i32
    %c0_i32_1 = arith.constant 0 : i32
    return %c0_i32, %c0_i32_0 : i32, i32
  }
  func.func @transform_4(%arg0: i32) -> (i32, i32) {
    %c0_i32 = arith.constant 0 : i32
    %c0_i32_0 = arith.constant 0 : i32
    %c0_i32_1 = arith.constant 0 : i32
    return %c0_i32, %c0_i32_0 : i32, i32
  }
  func.func @transform_5(%arg0: i32) -> (i32, i32) {
    %c0_i32 = arith.constant 0 : i32
    %c0_i32_0 = arith.constant 0 : i32
    %c0_i32_1 = arith.constant 0 : i32
    return %c0_i32, %c0_i32_0 : i32, i32
  }
  func.func @transform_6(%arg0: i32) -> (i32, i32) {
    %c0_i32 = arith.constant 0 : i32
    %c0_i32_0 = arith.constant 0 : i32
    %c0_i32_1 = arith.constant 0 : i32
    return %c0_i32, %c0_i32_0 : i32, i32
  }
  func.func @transform_7(%arg0: i32) -> (i32, i32) {
    %c0_i32 = arith.constant 0 : i32
    %c0_i32_0 = arith.constant 0 : i32
    return %arg0, %c0_i32 : i32, i32
  }
}

</mosaic_0001>

<bundles_post_ra>
// kernel: tpu_custom_call.1
= control target key start
LH: loop header
LB: loop body
LE: loop exit
PB: predicated region body
PF: predicated region fallthrough
CT: control target
= control target key end

     0   :  { %12 = vsyncpa [#allocation3], 0  ;;  %s709_s0 = inlined_call_operand.hbm [shape: f32[4,16], index: 0, kind: input, shape index: {}]   ;;  %s710_s1 = inlined_call_operand.hbm [shape: bf16[16,128], index: 1, kind: input, shape index: {}]   ;;  %s711_s2 = inlined_call_operand.vmem [shape: f32[1,128], index: 2, kind: input, shape index: {}]   ;;  %s712_s3 = inlined_call_operand.hbm [shape: bf16[128,128], index: 3, kind: input, shape index: {}]   ;;  %s713_s4 = inlined_call_operand.vmem [shape: f32[1,128], index: 4, kind: input, shape index: {}]   ;;  %s714_s5 = inlined_call_operand.hbm [shape: bf16[128,128], index: 5, kind: input, shape index: {}]   ;;  %s715_s6 = inlined_call_operand.vmem [shape: f32[1,128], index: 6, kind: input, shape index: {}]   ;;  %s716_s7 = inlined_call_operand.hbm [shape: f32[4,128], index: 7, kind: output, shape index: {}]  }
   0x1   :  { %13 = vsyncpa [#allocation6], 0 }
   0x2   :  { %14 = vsyncpa [#allocation9], 0 }
   0x3   :  { %15 = vsyncpa [#allocation4], 0  ;;  %s607_s24 = smov [#allocation5]  }
   0x4   :  { %s31_s25 = sshll.u32 %s607_s24, 4  ;;  %s32_s25 = int_to_ptr.vmem [resolvable:$true] %s31_s25 }
   0x5   :  { %s507_s26 = scalar_lea.vmem %s32_s25, 128  ;;  %p512_p1 = scmp.lt.s32.totalorder %s32_s25, %s32_s25 }
   0x6   :  { %p508_p0 = scmp.ne.s32.totalorder %s32_s25, %s507_s26  ;;  %p513_p2 = scmp.lt.s32.totalorder %s507_s26, %s507_s26 }
   0x8   :  { %p514_p3 = por %p513_p2, %p512_p1 }
   0xa   :  { %p515_p4 = pnand %p514_p3, %p508_p0 }
   0xc   :  { %518 = shalt.err (!%p515_p4)
}
   0xd   :  { %s608_s27 = smov 64   ;;  %s609_s28 = smov 4  }
   0xe   :  { %37 = dma.hbm_to_vmem [thread:$0]  %s710_s1, 128, %s32_s25, [#allocation6], %s608_s27, %s608_s27, %s609_s28  }
   0xf   :  { %s610_s8 = smov [#allocation2]   ;;  %s611_s10 = smov [#allocation7]  }
  0x10   :  { %s22_s9 = sshll.u32 %s610_s8, 4  ;;  %s45_s11 = sshll.u32 %s611_s10, 4  ;;  %s23_s9 = int_to_ptr.vmem [resolvable:$true] %s22_s9  ;;  %s46_s11 = int_to_ptr.vmem [resolvable:$true] %s45_s11 }
  0x11   :  { %s527_s12 = scalar_lea.vmem %s23_s9, 64  ;;  %p532_p6 = scmp.lt.s32.totalorder %s23_s9, %s23_s9 }
  0x12   :  { %p528_p5 = scmp.ne.s32.totalorder %s23_s9, %s527_s12  ;;  %p533_p7 = scmp.lt.s32.totalorder %s527_s12, %s527_s12 }
  0x14   :  { %p534_p8 = por %p533_p7, %p532_p6 }
  0x16   :  { %p535_p9 = pnand %p534_p8, %p528_p5 }
  0x18   :  { %538 = shalt.err (!%p535_p9)
}
  0x19   :  { %25 = dma.hbm_to_vmem [thread:$0]  %s709_s0, 64, %s23_s9, [#allocation3]  }
  0x1a   :  { %s547_s15 = scalar_lea.vmem %s46_s11, 1024  ;;  %p552_p11 = scmp.lt.s32.totalorder %s46_s11, %s46_s11 }
  0x1b   :  { %p548_p10 = scmp.ne.s32.totalorder %s46_s11, %s547_s15  ;;  %p553_p12 = scmp.lt.s32.totalorder %s547_s15, %s547_s15 }
  0x1d   :  { %p554_p13 = por %p553_p12, %p552_p11 }
  0x1f   :  { %p555_p0 = pnand %p554_p13, %p548_p10 }
  0x21   :  { %558 = shalt.err (!%p555_p0)
}
  0x22   :  { %51 = dma.hbm_to_vmem [thread:$0]  %s712_s3, 1024, %s46_s11, [#allocation6], %s608_s27, %s608_s27, %s609_s28  }
  0x23   :  { %s612_s17 = smov [#allocation8]  }
  0x24   :  { %s59_s18 = sshll.u32 %s612_s17, 4  ;;  %s60_s18 = int_to_ptr.vmem [resolvable:$true] %s59_s18 }
  0x25   :  { %s567_s19 = scalar_lea.vmem %s60_s18, 1024  ;;  %p572_p2 = scmp.lt.s32.totalorder %s60_s18, %s60_s18 }
  0x26   :  { %p568_p1 = scmp.ne.s32.totalorder %s60_s18, %s567_s19  ;;  %p573_p3 = scmp.lt.s32.totalorder %s567_s19, %s567_s19 }
  0x28   :  { %p574_p4 = por %p573_p3, %p572_p2 }
  0x2a   :  { %p575_p5 = pnand %p574_p4, %p568_p1 }
  0x2c   :  { %578 = shalt.err (!%p575_p5)
}
  0x2d   :  { %65 = dma.hbm_to_vmem [thread:$0]  %s714_s5, 1024, %s60_s18, [#allocation9], %s608_s27, %s608_s27, %s609_s28  }
  0x2e   :  { %599 = dma.done.wait [#allocation3], 64  }
  0x2f   :  { %600 = vsyncadd [#allocation3], 4294967232 }
  0x30   :  { %601 = dma.done.wait [#allocation6], 1152  }
  0x31   :  { %602 = vsyncadd [#allocation6], 4294966144 }
  0x32   :  { %603 = dma.done.wait [#allocation9], 1024  }
  0x33   :  { %604 = vsyncadd [#allocation9], 4294966272  ;;  %v613_v0 = vmov 0.0   ;;  %vm614_vm0 = vmmov 0   ;;  %v482_v1 = vld [vmem:[#allocation5] sm:$0xff]   ;;  %vm98_vm1 = vcmask 130048  }
  0x34   :  { %427 = vmatprep.subr.bf16.mxu0 %v613_v0  ;;  %429 = vmatprep.mubr.msk.bf16.mxu0 %vm614_vm0, %v613_v0  ;;  %v81_v2 = vld [vmem:[#allocation2] sm:$0xf]  ;;  %v483_v4 = vld [vmem:[#allocation7 + $0x38] sm:$0xff]   ;;  %v485_v6 = vld [vmem:[#allocation7 + $0x28] sm:$0xff]   ;;  %s615_s24 = smov [#allocation10]  }
  0x35   :  { %433 = vmatprep.subr.bf16.mxu1 %v613_v0  ;;  %449 = vmatprep.mubr.msk.bf16.mxu1 %vm614_vm0, %v613_v0  ;;  %v85_v3 = vpack.c.bf16 %v81_v2, %v81_v2  ;;  %v484_v5 = vld [vmem:[#allocation7 + $0x30] sm:$0xff]   ;;  %v486_v7 = vld [vmem:[#allocation7 + $0x20] sm:$0xff]   ;;  %v487_v8 = vld [vmem:[#allocation7 + $0x18] sm:$0xff]   ;;  %s375_s25 = sshll.u32 %s615_s24, 4  ;;  %s376_s25 = int_to_ptr.vmem [resolvable:$true] %s375_s25 }
  0x36   :  { %428 = vmatpush3.bf16.msra.mxu0 %v482_v1  ;;  %434 = vmatpush3.bf16.msra.mxu1 %v483_v4  ;;  %v488_v9 = vld [vmem:[#allocation7 + $0x10] sm:$0xff]   ;;  %v489_v10 = vld [vmem:[#allocation7 + $0x8] sm:$0xff]   ;;  %v490_v11 = vld [vmem:[#allocation7] sm:$0xff]   ;;  %p584_p7 = scmp.lt.s32.totalorder %s376_s25, %s376_s25 }
  0x37   :  { %453 = vmatprep.subr.bf16.mxu0 %v613_v0  ;;  %435 = vmatprep.subr.bf16.mxu1 %v613_v0  ;;  %v491_v12 = vld [vmem:[#allocation8 + $0x38] sm:$0xff]   ;;  %v492_v13 = vld [vmem:[#allocation8 + $0x30] sm:$0xff]   ;;  %v493_v14 = vld [vmem:[#allocation8 + $0x28] sm:$0xff]  }
  0x38   :  { %v494_v15 = vld [vmem:[#allocation8 + $0x20] sm:$0xff]   ;;  %v495_v16 = vld [vmem:[#allocation8 + $0x18] sm:$0xff]   ;;  %v496_v17 = vld [vmem:[#allocation8 + $0x10] sm:$0xff]  }
  0x39   :  { %430 = vmatmul.mubr.msk.bf16.vlgmr.msra.gmra.mxu0 %vm98_vm1, %v85_v3  ;;  %v386_v18 = vld [vmem:[%s711_s2] ss:$0 sm:$0xff]  ;;  %v497_v26 = vld [vmem:[#allocation8 + $0x8] sm:$0xff]   ;;  %v498_v27 = vld [vmem:[#allocation8] sm:$0xff]  }
  0x3a   :  { %469 = vmatprep.mubr.msk.bf16.mxu0 %vm614_vm0, %v613_v0  ;;  %436 = vmatpush3.bf16.msra.mxu1 %v484_v5  ;;  %v389_v28 = vld [vmem:[%s713_s4] ss:$0 sm:$0xff]  ;;  %s579_s4 = scalar_lea.vmem %s376_s25, 64 }
  0x3b   :  { %437 = vmatprep.subr.bf16.mxu1 %v613_v0  ;;  %454 = vmatpush3.bf16.msra.mxu0 %v491_v12  ;;  %v398_v36 = vld [vmem:[%s715_s6] ss:$0 sm:$0xff]  ;;  %p580_p6 = scmp.ne.s32.totalorder %s376_s25, %s579_s4  ;;  %p585_p8 = scmp.lt.s32.totalorder %s579_s4, %s579_s4 }
  0x3c   :  { %455 = vmatprep.subr.bf16.mxu0 %v613_v0 }
  0x3d   :  { %p586_p9 = por %p585_p8, %p584_p7 }
  0x3e   :  { %438 = vmatpush3.bf16.msra.mxu1 %v485_v6 }
  0x3f   :  { %439 = vmatprep.subr.bf16.mxu1 %v613_v0  ;;  %456 = vmatpush3.bf16.msra.mxu0 %v492_v13  ;;  %p587_p10 = pnand %p586_p9, %p580_p6 }
  0x40   :  { %457 = vmatprep.subr.bf16.mxu0 %v613_v0 }
  0x42   :  { %440 = vmatpush3.bf16.msra.mxu1 %v486_v7 }
  0x43   :  { %441 = vmatprep.subr.bf16.mxu1 %v613_v0  ;;  %458 = vmatpush3.bf16.msra.mxu0 %v493_v14 }
  0x44   :  { %459 = vmatprep.subr.bf16.mxu0 %v613_v0 }
  0x46   :  { %442 = vmatpush3.bf16.msra.mxu1 %v487_v8 }
  0x47   :  { %443 = vmatprep.subr.bf16.mxu1 %v613_v0  ;;  %460 = vmatpush3.bf16.msra.mxu0 %v494_v15 }
  0x48   :  { %461 = vmatprep.subr.bf16.mxu0 %v613_v0 }
  0x4a   :  { %444 = vmatpush3.bf16.msra.mxu1 %v488_v9 }
  0x4b   :  { %445 = vmatprep.subr.bf16.mxu1 %v613_v0  ;;  %462 = vmatpush3.bf16.msra.mxu0 %v495_v16 }
  0x4c   :  { %463 = vmatprep.subr.bf16.mxu0 %v613_v0 }
  0x4e   :  { %446 = vmatpush3.bf16.msra.mxu1 %v489_v10 }
  0x4f   :  { %447 = vmatprep.subr.bf16.mxu1 %v613_v0  ;;  %464 = vmatpush3.bf16.msra.mxu0 %v496_v17 }
  0x50   :  { %465 = vmatprep.subr.bf16.mxu0 %v613_v0 }
  0x52   :  { %448 = vmatpush3.bf16.msra.mxu1 %v490_v11 }
  0x53   :  { %466 = vmatpush3.bf16.msra.mxu0 %v497_v26 }
  0x54   :  { %467 = vmatprep.subr.bf16.mxu0 %v613_v0 }
  0x57   :  { %468 = vmatpush3.bf16.msra.mxu0 %v498_v27 }
  0xf9   :  { %v136_v19 = vpop.f32.mrf.mxu0 }
  0xfa   :  { %v137_v20 = vadd.f32 %v386_v18, %v136_v19 }
  0xfb   :  { %v431_v21 = vpop.f32.mrf.mxu0 }
  0xfc   :  { %v142_v22 = vmax.f32 %v137_v20, 0.0 }
  0xfd   :  { %v139_v23 = vpop.f32.mrf.mxu0 }
  0xfe   :  { %v160_v24 = vpack.c.bf16 %v142_v22, %v142_v22 }
  0xff   :  { %v432_v25 = vpop.f32.mrf.mxu0 }
 0x100   :  { %450 = vmatmul.mubr.bf16.vlgmr.msra.gmra.mxu1 %v160_v24 }
 0x1c0   :  { %v249_v29 = vpop.f32.mrf.mxu1 }
 0x1c1   :  { %v250_v30 = vadd.f32 %v389_v28, %v249_v29 }
 0x1c2   :  { %v451_v31 = vpop.f32.mrf.mxu1 }
 0x1c3   :  { %v255_v32 = vmax.f32 %v250_v30, 0.0 }
 0x1c4   :  { %v252_v33 = vpop.f32.mrf.mxu1 }
 0x1c5   :  { %v273_v34 = vpack.c.bf16 %v255_v32, %v255_v32 }
 0x1c6   :  { %v452_v35 = vpop.f32.mrf.mxu1 }
 0x1c7   :  { %470 = vmatmul.mubr.bf16.vlgmr.msra.gmra.mxu0 %v273_v34 }
 0x287   :  { %v362_v37 = vpop.f32.mrf.mxu0 }
 0x288   :  { %v363_v38 = vadd.f32 %v398_v36, %v362_v37 }
 0x289   :  { %v471_v39 = vpop.f32.mrf.mxu0 }
 0x28a   :  { %368 = vst [vmem:[#allocation10] sm:$0xf] %v363_v38 }
 0x28b   :  { %v365_v40 = vpop.f32.mrf.mxu0 }
 0x28c   :  { %590 = shalt.err (!%p587_p10)
}
 0x28d   :  { %378 = dma.vmem_to_hbm [thread:$0]  %s376_s25, 64, %s716_s7, [#allocation4]   ;;  %v472_v41 = vpop.f32.mrf.mxu0 }
 0x28e   :  { %605 = dma.done.wait [#allocation4], 64  }
 0x28f   :  { %606 = vsyncadd [#allocation4], 4294967232 }
 0x290   :  { %382 = vsyncpa [#allocation3], 1 }
 0x291   :  { %383 = vsyncpa [#allocation6], 1 }
 0x292   :  { %384 = vsyncpa [#allocation9], 1 }
 0x293   :  { %385 = vsyncpa [#allocation4], 1 }

</bundles_post_ra>
